<compile_context>
chip_gen: v6e
topology: v6e:2x2x1
jax: 0.10.0
libtpu: 0.0.40
codegen_flags: <defaults>
</compile_context>

<pallas_src>
import functools

import jax
import jax.numpy as jnp
from jax.experimental import pallas as pl
from jax.experimental.pallas import tpu as pltpu


_VMEM_LIMIT = 32 * 1024 * 1024   # explicit budget; safe on v5e/v6e (128 MiB) and v7x (64 MiB)
_BN_EPS = 1e-5


# ---------------------------------------------------------------------------
# Padding / tiling helpers
# ---------------------------------------------------------------------------
def _round_up(x, m):
    return (x + m - 1) // m * m


def _tile(dim, cap=256):
    """Tile size: 256 for large dims (good HBM roofline), 128 minimum (lane width)."""
    return cap if dim >= cap else 128


def _pad2d(x, rows, cols, dtype):
    buf = jnp.zeros((rows, cols), dtype)
    return buf.at[: x.shape[0], : x.shape[1]].set(x.astype(dtype))


def _pad_vec(v, cols):
    return _pad2d(v.reshape(1, -1), 1, cols, jnp.float32)


# ---------------------------------------------------------------------------
# Kernel 1: tiled fused  (X @ W [+ b]) -> optional ReLU -> optional affine
# ---------------------------------------------------------------------------
def _fused_matmul_kernel(*refs, do_relu, has_bias, has_affine):
    x_ref, w_ref = refs[0], refs[1]
    pos = 2
    if has_bias:
        b_ref = refs[pos]; pos += 1
    if has_affine:
        scale_ref, shift_ref = refs[pos], refs[pos + 1]; pos += 2
    o_ref, acc_ref = refs[pos], refs[pos + 1]

    k = pl.program_id(2)

    @pl.when(k == 0)
    def _init():
        acc_ref[...] = jnp.zeros_like(acc_ref)

    acc_ref[...] += jnp.dot(x_ref[...], w_ref[...],
                            preferred_element_type=jnp.float32)

    @pl.when(k == pl.num_programs(2) - 1)
    def _epilogue():
        y = acc_ref[...]
        if has_bias:
            y = y + b_ref[...]
        if do_relu:
            y = jnp.maximum(y, 0.0)
        if has_affine:
            y = y * scale_ref[...] + shift_ref[...]
        o_ref[...] = y.astype(o_ref.dtype)


def fused_matmul(x, w, bias=None, scale=None, shift=None, *, do_relu=False):
    """y = affine(relu_opt(x @ w + bias)); tiled/pipelined; bf16 MXU, f32 accumulate."""
    M, K = x.shape
    K2, N = w.shape
    assert K == K2
    has_bias = bias is not None
    has_affine = scale is not None

    tm, tn, tk = _tile(M), _tile(N), _tile(K)
    Mp, Np, Kp = _round_up(M, tm), _round_up(N, tn), _round_up(K, tk)

    x_p = _pad2d(x, Mp, Kp, jnp.bfloat16)
    w_p = _pad2d(w, Kp, Np, jnp.bfloat16)

    in_specs = [
        pl.BlockSpec((tm, tk), lambda i, j, k: (i, k)),
        pl.BlockSpec((tk, tn), lambda i, j, k: (k, j)),
    ]
    operands = [x_p, w_p]
    vec_spec = pl.BlockSpec((1, tn), lambda i, j, k: (0, j))
    if has_bias:
        operands.append(_pad_vec(bias, Np)); in_specs.append(vec_spec)
    if has_affine:
        operands += [_pad_vec(scale, Np), _pad_vec(shift, Np)]
        in_specs += [vec_spec, vec_spec]

    grid = (Mp // tm, Np // tn, Kp // tk)
    out = pl.pallas_call(
        functools.partial(_fused_matmul_kernel, do_relu=do_relu,
                          has_bias=has_bias, has_affine=has_affine),
        out_shape=jax.ShapeDtypeStruct((Mp, Np), jnp.float32),
        grid_spec=pltpu.PrefetchScalarGridSpec(
            num_scalar_prefetch=0,
            grid=grid,
            in_specs=in_specs,
            out_specs=pl.BlockSpec((tm, tn), lambda i, j, k: (i, j)),
            scratch_shapes=[pltpu.VMEM((tm, tn), jnp.float32)]),
        compiler_params=pltpu.CompilerParams(
            dimension_semantics=("parallel", "parallel", "arbitrary"),
            vmem_limit_bytes=_VMEM_LIMIT),
    )(*operands)
    return out[:M, :N]


# ---------------------------------------------------------------------------
# Kernel 2: fused GCN layer  A_norm @ (X @ W) + b -> optional ReLU -> optional affine
#           (XW tile is produced and consumed inside the kernel: no HBM round trip)
# ---------------------------------------------------------------------------
def _fused_gcn_kernel(*refs, do_relu, has_affine):
    a_ref, x_ref, w_ref, b_ref = refs[0], refs[1], refs[2], refs[3]
    pos = 4
    if has_affine:
        scale_ref, shift_ref = refs[pos], refs[pos + 1]; pos += 2
    o_ref, acc_ref = refs[pos], refs[pos + 1]

    k = pl.program_id(2)

    @pl.when(k == 0)
    def _init():
        acc_ref[...] = jnp.zeros_like(acc_ref)

    # XW tile stays resident in VMEM/vregs; the feature dim is small for GCN layers.
    xw = jnp.dot(x_ref[...], w_ref[...], preferred_element_type=jnp.float32)
    acc_ref[...] += jnp.dot(a_ref[...], xw.astype(jnp.bfloat16),
                            preferred_element_type=jnp.float32)

    @pl.when(k == pl.num_programs(2) - 1)
    def _epilogue():
        y = acc_ref[...] + b_ref[...]
        if do_relu:
            y = jnp.maximum(y, 0.0)
        if has_affine:
            y = y * scale_ref[...] + shift_ref[...]
        o_ref[...] = y.astype(o_ref.dtype)


def fused_gcn_layer(a_norm, x, w, b, scale=None, shift=None, *, do_relu=False):
    """One GraphConv layer (norm='both' dense form): affine(relu_opt(A @ (X@W) + b))."""
    n_nodes = a_norm.shape[0]
    f_in, f_out = w.shape
    has_affine = scale is not None

    tm = _tile(n_nodes)
    tk = _tile(n_nodes)
    tn = _tile(f_out)
    Mp = _round_up(n_nodes, tm)
    Kp = _round_up(n_nodes, tk)
    Fp = _round_up(f_in, 128)
    Np = _round_up(f_out, tn)

    a_p = _pad2d(a_norm, Mp, Kp, jnp.bfloat16)
    x_p = _pad2d(x, Kp, Fp, jnp.bfloat16)
    w_p = _pad2d(w, Fp, Np, jnp.bfloat16)
    b_p = _pad_vec(b, Np)

    in_specs = [
        pl.BlockSpec((tm, tk), lambda i, j, k: (i, k)),   # A tile
        pl.BlockSpec((tk, Fp), lambda i, j, k: (k, 0)),   # X tile (full feature dim)
        pl.BlockSpec((Fp, tn), lambda i, j, k: (0, j)),   # W tile
        pl.BlockSpec((1, tn), lambda i, j, k: (0, j)),    # bias
    ]
    operands = [a_p, x_p, w_p, b_p]
    if has_affine:
        operands += [_pad_vec(scale, Np), _pad_vec(shift, Np)]
        in_specs += [pl.BlockSpec((1, tn), lambda i, j, k: (0, j))] * 2

    grid = (Mp // tm, Np // tn, Kp // tk)
    out = pl.pallas_call(
        functools.partial(_fused_gcn_kernel, do_relu=do_relu, has_affine=has_affine),
        out_shape=jax.ShapeDtypeStruct((Mp, Np), jnp.float32),
        grid_spec=pltpu.PrefetchScalarGridSpec(
            num_scalar_prefetch=0,
            grid=grid,
            in_specs=in_specs,
            out_specs=pl.BlockSpec((tm, tn), lambda i, j, k: (i, j)),
            scratch_shapes=[pltpu.VMEM((tm, tn), jnp.float32)]),
        compiler_params=pltpu.CompilerParams(
            dimension_semantics=("parallel", "parallel", "arbitrary"),
            vmem_limit_bytes=_VMEM_LIMIT),
    )(*operands)
    return out[:n_nodes, :f_out]


# ---------------------------------------------------------------------------
# Parameter construction (deterministic)
# ---------------------------------------------------------------------------
def _dense_params(key, in_dim, out_dim, scale=0.05):
    kw, kb = jax.random.split(key)
    w = scale * jax.random.normal(kw, (in_dim, out_dim), jnp.float32)
    b = scale * jax.random.normal(kb, (out_dim,), jnp.float32)
    return w, b


def _bn_params(key, dim):
    kg, kb = jax.random.split(key)
    gamma = 1.0 + 0.1 * jax.random.normal(kg, (dim,), jnp.float32)
    beta = 0.1 * jax.random.normal(kb, (dim,), jnp.float32)
    # eval-mode with running_mean=0, running_var=1:
    scale = gamma / jnp.sqrt(1.0 + _BN_EPS)
    shift = beta
    return scale, shift


def make_encoder_params(key, input_dim, latent_dim, output_dim):
    ks = jax.random.split(key, 5)
    w1, b1 = _dense_params(ks[0], input_dim, 500)
    s1, t1 = _bn_params(ks[1], 500)
    w2, b2 = _dense_params(ks[2], 500, latent_dim)
    s2, t2 = _bn_params(ks[3], latent_dim)
    wd, bd = _dense_params(ks[4], latent_dim, output_dim)
    return dict(w1=w1, b1=b1, s1=s1, t1=t1,
                w2=w2, b2=b2, s2=s2, t2=t2,
                wd=wd, bd=bd)


def make_gcn_mme_params(key, input_dims, latent_dims, decoder_dim,
                        hidden_feats, num_classes):
    params = {"encoders": [], "gnn_w": [], "gnn_b": [],
              "bn_scale": [], "bn_shift": []}
    n_layers = len(hidden_feats) + 1
    keys = jax.random.split(key, len(input_dims) + 2 * n_layers)
    k = 0
    for m in range(len(input_dims)):
        params["encoders"].append(
            make_encoder_params(keys[k], input_dims[m], latent_dims[m], decoder_dim))
        k += 1
    dims_in = [decoder_dim] + list(hidden_feats)
    dims_out = list(hidden_feats) + [num_classes]
    for l in range(n_layers):
        w, b = _dense_params(keys[k], dims_in[l], dims_out[l]); k += 1
        params["gnn_w"].append(w)
        params["gnn_b"].append(b)
        if l < n_layers - 1:
            s, t = _bn_params(keys[k], dims_out[l]); k += 1
            params["bn_scale"].append(s)
            params["bn_shift"].append(t)
    return params


# ---------------------------------------------------------------------------
# Forward pass (glue in plain JAX; all matmuls inside the Pallas kernels)
# ---------------------------------------------------------------------------
def encoder_forward(p, x):
    e = fused_matmul(x, p["w1"], bias=p["b1"], scale=p["s1"], shift=p["t1"])  # Linear+BN1
    e = fused_matmul(e, p["w2"], bias=p["b2"], scale=p["s2"], shift=p["t2"])  # Linear+BN2
    d = fused_matmul(e, p["wd"], bias=p["bd"])                                 # decoder
    return d


def gcn_mme_forward(params, a_norm_list, h, input_dims):
    node_features = 0.0
    prev = 0
    for i, dim in enumerate(input_dims):
        x = h[:, prev:prev + dim]
        nan_rows = jnp.any(jnp.isnan(x), axis=1)                   # (n,)
        x_clean = jnp.where(nan_rows[:, None], 0.0, x)             # encoder is row-wise
        dec = encoder_forward(params["encoders"][i], x_clean)      # (n, decoder_dim)
        # torch.median (lower median) over the non-NaN rows, per feature
        masked = jnp.where(nan_rows[:, None], jnp.inf, dec)
        srt = jnp.sort(masked, axis=0)
        k_valid = jnp.sum(jnp.logical_not(nan_rows)).astype(jnp.int32)
        med_idx = jnp.maximum((k_valid - 1) // 2, 0)               # guard all-NaN modality
        median = jnp.take(srt, med_idx, axis=0)                    # (decoder_dim,)
        median = jnp.where(k_valid > 0, median, 0.0)
        dec_imputed = jnp.where(nan_rows[:, None], median[None, :], dec)
        node_features = node_features + dec_imputed
        prev += dim
    hcur = node_features / float(len(input_dims))

    n_layers = len(params["gnn_w"])
    for l in range(n_layers):
        w, b = params["gnn_w"][l], params["gnn_b"][l]
        if l != n_layers - 1:
            # GraphConv -> ReLU -> BatchNorm(eval affine) fused in one kernel
            hcur = fused_gcn_layer(a_norm_list[l], hcur, w, b,
                                   scale=params["bn_scale"][l],
                                   shift=params["bn_shift"][l],
                                   do_relu=True)
            # dropout -> identity (eval)
        else:
            hcur = fused_gcn_layer(a_norm_list[l], hcur, w, b)
    return hcur


def make_norm_adjacency(key, n):
    """Random symmetric graph + self loops, symmetric normalization (DGL norm='both')."""
    r = jax.random.uniform(key, (n, n))
    adj = (r + r.T > 1.2).astype(jnp.float32)
    adj = adj * (1.0 - jnp.eye(n)) + jnp.eye(n)                    # self loops
    deg = jnp.sum(adj, axis=1)
    d_inv_sqrt = 1.0 / jnp.sqrt(deg)
    return adj * d_inv_sqrt[:, None] * d_inv_sqrt[None, :]


# ---------------------------------------------------------------------------
if __name__ == "__main__":
    key = jax.random.PRNGKey(0)
    k_param, k_feat, k_g1, k_g2 = jax.random.split(key, 4)

    # small, module-consistent shapes
    num_nodes = 8
    input_dims = [16, 12]          # two omic modalities
    latent_dims = [32, 32]
    decoder_dim = 24
    hidden_feats = [32]
    num_classes = 4

    params = make_gcn_mme_params(k_param, input_dims, latent_dims,
                                 decoder_dim, hidden_feats, num_classes)

    # node feature matrix (num_nodes, sum(input_dims)) with a few NaN rows
    h = jax.random.normal(k_feat, (num_nodes, sum(input_dims)), jnp.float32)
    h = h.at[1, 0:input_dims[0]].set(jnp.nan)                      # modality-0 missing
    h = h.at[3, input_dims[0]:].set(jnp.nan)                       # modality-1 missing

    # one normalized adjacency per GNN layer (len(hidden_feats)+1 layers)
    a_norms = [make_norm_adjacency(k_g1, num_nodes),
               make_norm_adjacency(k_g2, num_nodes)]

    out = gcn_mme_forward(params, a_norms, h, input_dims)
    out = jax.block_until_ready(out)
    assert out.shape == (num_nodes, num_classes)
    assert bool(jnp.all(jnp.isfinite(out)))
    print("KERNEL_OK")
</pallas_src>

<mosaic_0001>
module attributes {stable_mosaic.version = 11 : i64} {
  func.func @_fused_matmul_kernel(%arg0: i32, %arg1: i32, %arg2: i32, %arg3: memref<128x128xbf16, #tpu.memory_space<vmem>>, %arg4: memref<128x256xbf16, #tpu.memory_space<vmem>>, %arg5: memref<1x256xf32, #tpu.memory_space<vmem>>, %arg6: memref<1x256xf32, #tpu.memory_space<vmem>>, %arg7: memref<1x256xf32, #tpu.memory_space<vmem>>, %arg8: memref<128x256xf32, #tpu.memory_space<vmem>>, %arg9: memref<128x256xf32, #tpu.memory_space<vmem>>) attributes {dimension_semantics = [#tpu.dimension_semantics<parallel>, #tpu.dimension_semantics<parallel>, #tpu.dimension_semantics<arbitrary>], iteration_bounds = array<i64: 1, 2, 1>, scalar_prefetch = 0 : i64, scratch_operands = 1 : i64, tpu.core_type = #tpu.core_type<tc>, window_params = [{transform_indices = @transform_0, window_bounds = array<i64: 128, 128>}, {transform_indices = @transform_1, window_bounds = array<i64: 128, 256>}, {transform_indices = @transform_2, window_bounds = array<i64: 1, 256>}, {transform_indices = @transform_3, window_bounds = array<i64: 1, 256>}, {transform_indices = @transform_4, window_bounds = array<i64: 1, 256>}, {transform_indices = @transform_5, window_bounds = array<i64: 128, 256>}]} {
    %c0_i32 = arith.constant 0 : i32
    %0 = arith.cmpi eq, %arg2, %c0_i32 : i32
    %1 = arith.extui %0 : i1 to i32
    %c0_i32_0 = arith.constant 0 : i32
    %2 = arith.cmpi ne, %1, %c0_i32_0 : i32
    scf.if %2 {
      %cst_10 = arith.constant 0.000000e+00 : f32
      %12 = vector.broadcast %cst_10 : f32 to vector<128x256xf32>
      %c0_11 = arith.constant 0 : index
      %c0_12 = arith.constant 0 : index
      %13 = vector.load %arg9[%c0_11, %c0_12] : memref<128x256xf32, #tpu.memory_space<vmem>>, vector<128x256xf32>
      tpu.vector_store %arg9[%c0_11, %c0_12], %12 {strides = array<i32>} : memref<128x256xf32, #tpu.memory_space<vmem>>, vector<128x256xf32>,
    } else {
    }
    %c0 = arith.constant 0 : index
    %c0_1 = arith.constant 0 : index
    %3 = vector.load %arg9[%c0, %c0_1] : memref<128x256xf32, #tpu.memory_space<vmem>>, vector<128x256xf32>
    %c0_2 = arith.constant 0 : index
    %c0_3 = arith.constant 0 : index
    %4 = vector.load %arg3[%c0_2, %c0_3] : memref<128x128xbf16, #tpu.memory_space<vmem>>, vector<128x128xbf16>
    %c0_4 = arith.constant 0 : index
    %c0_5 = arith.constant 0 : index
    %5 = vector.load %arg4[%c0_4, %c0_5] : memref<128x256xbf16, #tpu.memory_space<vmem>>, vector<128x256xbf16>
    %cst = arith.constant dense<0.000000e+00> : vector<128x256xf32>
    %6 = tpu.matmul %4, %5, %cst {dimension_numbers = #tpu.dot_dimension_numbers<[1], [0], [0], [1], [0, 0, 1, 1], [], []>} : vector<128x128xbf16>, vector<128x256xbf16>, vector<128x256xf32> -> vector<128x256xf32>
    %7 = arith.addf %3, %6 : vector<128x256xf32>
    %c0_6 = arith.constant 0 : index
    %c0_7 = arith.constant 0 : index
    %8 = vector.load %arg9[%c0_6, %c0_7] : memref<128x256xf32, #tpu.memory_space<vmem>>, vector<128x256xf32>
    tpu.vector_store %arg9[%c0_6, %c0_7], %7 {strides = array<i32>} : memref<128x256xf32, #tpu.memory_space<vmem>>, vector<128x256xf32>,
    %c0_i32_8 = arith.constant 0 : i32
    %9 = arith.cmpi eq, %arg2, %c0_i32_8 : i32
    %10 = arith.extui %9 : i1 to i32
    %c0_i32_9 = arith.constant 0 : i32
    %11 = arith.cmpi ne, %10, %c0_i32_9 : i32
    scf.if %11 {
      %c0_10 = arith.constant 0 : index
      %c0_11 = arith.constant 0 : index
      %12 = vector.load %arg9[%c0_10, %c0_11] : memref<128x256xf32, #tpu.memory_space<vmem>>, vector<128x256xf32>
      %c0_12 = arith.constant 0 : index
      %c0_13 = arith.constant 0 : index
      %13 = vector.load %arg5[%c0_12, %c0_13] : memref<1x256xf32, #tpu.memory_space<vmem>>, vector<1x256xf32>
      %14 = vector.broadcast %13 : vector<1x256xf32> to vector<128x256xf32>
      %15 = arith.addf %12, %14 : vector<128x256xf32>
      %c0_14 = arith.constant 0 : index
      %c0_15 = arith.constant 0 : index
      %16 = vector.load %arg6[%c0_14, %c0_15] : memref<1x256xf32, #tpu.memory_space<vmem>>, vector<1x256xf32>
      %17 = vector.broadcast %16 : vector<1x256xf32> to vector<128x256xf32>
      %18 = arith.mulf %15, %17 : vector<128x256xf32>
      %c0_16 = arith.constant 0 : index
      %c0_17 = arith.constant 0 : index
      %19 = vector.load %arg7[%c0_16, %c0_17] : memref<1x256xf32, #tpu.memory_space<vmem>>, vector<1x256xf32>
      %20 = vector.broadcast %19 : vector<1x256xf32> to vector<128x256xf32>
      %21 = arith.addf %18, %20 : vector<128x256xf32>
      %c0_18 = arith.constant 0 : index
      %c0_19 = arith.constant 0 : index
      %22 = vector.load %arg8[%c0_18, %c0_19] : memref<128x256xf32, #tpu.memory_space<vmem>>, vector<128x256xf32>
      tpu.vector_store %arg8[%c0_18, %c0_19], %21 {strides = array<i32>} : memref<128x256xf32, #tpu.memory_space<vmem>>, vector<128x256xf32>,
    } else {
    }
    return
  }
  func.func @transform_0(%arg0: i32, %arg1: i32, %arg2: i32) -> (i32, i32) {
    %c0_i32 = arith.constant 0 : i32
    return %arg0, %arg2 : i32, i32
  }
  func.func @transform_1(%arg0: i32, %arg1: i32, %arg2: i32) -> (i32, i32) {
    %c0_i32 = arith.constant 0 : i32
    return %arg2, %arg1 : i32, i32
  }
  func.func @transform_2(%arg0: i32, %arg1: i32, %arg2: i32) -> (i32, i32) {
    %c0_i32 = arith.constant 0 : i32
    %c0_i32_0 = arith.constant 0 : i32
    return %c0_i32, %arg1 : i32, i32
  }
  func.func @transform_3(%arg0: i32, %arg1: i32, %arg2: i32) -> (i32, i32) {
    %c0_i32 = arith.constant 0 : i32
    %c0_i32_0 = arith.constant 0 : i32
    return %c0_i32, %arg1 : i32, i32
  }
  func.func @transform_4(%arg0: i32, %arg1: i32, %arg2: i32) -> (i32, i32) {
    %c0_i32 = arith.constant 0 : i32
    %c0_i32_0 = arith.constant 0 : i32
    return %c0_i32, %arg1 : i32, i32
  }
  func.func @transform_5(%arg0: i32, %arg1: i32, %arg2: i32) -> (i32, i32) {
    %c0_i32 = arith.constant 0 : i32
    return %arg0, %arg1 : i32, i32
  }
}

</mosaic_0001>

<bundles_post_ra>
// kernel: tpu_custom_call.1
= control target key start
LH: loop header
LB: loop body
LE: loop exit
PB: predicated region body
PF: predicated region fallthrough
CT: control target
= control target key end

     0   :  { %s2014_s0 = inlined_call_operand.hbm [shape: bf16[128,128], index: 0, kind: input, shape index: {}]   ;;  %s2015_s1 = inlined_call_operand.hbm [shape: bf16[128,512], index: 1, kind: input, shape index: {}]   ;;  %s2016_s2 = inlined_call_operand.hbm [shape: f32[1,512], index: 2, kind: input, shape index: {}]   ;;  %s2017_s3 = inlined_call_operand.vmem [shape: f32[1,512], index: 3, kind: input, shape index: {}]   ;;  %s2018_s4 = inlined_call_operand.hbm [shape: f32[1,512], index: 4, kind: input, shape index: {}]   ;;  %s2019_s5 = inlined_call_operand.hbm [shape: f32[128,512], index: 5, kind: output, shape index: {}]  }
   0x1   :  { %2026 = sst [smem:[#allocation17_spill]] %s2014_s0 }
   0x2   :  { %2027 = sst [smem:[#allocation18_spill]] %s2015_s1 }
   0x3   :  { %2028 = sst [smem:[#allocation19_spill]] %s2016_s2 }
   0x4   :  { %10 = vsyncpa [#allocation4], 0 }
   0x5   :  { %11 = vsyncpa [#allocation7], 0 }
   0x6   :  { %13 = vsyncpa [#allocation7 + $0x1], 0 }
   0x7   :  { %14 = vsyncpa [#allocation10], 0 }
   0x8   :  { %16 = vsyncpa [#allocation10 + $0x1], 0 }
   0x9   :  { %17 = vsyncpa [#allocation5], 0 }
   0xa   :  { %19 = vsyncpa [#allocation5 + $0x1], 0  ;;  %s1612_s18 = smov 0   ;;  %s1614_s19 = smov 0  }
   0xb   :  { %s1616_s20 = smov 0   ;;  %s1618_s21 = smov 0  }
   0xc   :  { %s1620_s22 = smov 0   ;;  %s1622_s23 = smov 0  }
   0xd LB: > { %s40_s24 = sadd.s32 1, %s1562_s22  ;;  %s81_s25 = sadd.s32 1, %s1554_s20  ;;  %s1566_s23 = sphi %s1622_s23, %s25_s23   ;;  %s1562_s22 = sphi %s1620_s22, %s2053_s22   ;;  %s1558_s21 = sphi %s1618_s21, %s2052_s21   ;;  %s1554_s20 = sphi %s1616_s20, %s2051_s20   ;;  %s1550_s19 = sphi %s1614_s19, %s2050_s19   ;;  %s1546_s18 = sphi %s1612_s18, %s2049_s18  }
   0xe   : > { %p42_p0 = scmp.ge.s32.totalorder %s40_s24, 2  ;;  %p88_p1 = scmp.ne.s32.totalorder %s1554_s20, %s1550_s19 }
   0xf   : > { %p89_p2 = scmp.eq.s32.totalorder %s1566_s23, 0  ;;  %p1275_p5 = scmp.lt.s32.totalorder %s1566_s23, 2 }
  0x10   : > { %s2055_s24 = smov (%p42_p0, %s40_s24), 0  ;;  %s241_s27 = sand.u32 1, %s1566_s23  }
  0x11   : > { %2029 = sst [smem:[#allocation16_spill]] %s2055_s24  ;;  %p90_p4 = por %p89_p2, %p88_p1 }
  0x12   : > { %s77_s26 = ssub.s32 %s1562_s22, %s2055_s24  ;;  %s1658_s28 = sand.u32 1, %s1554_s20  }
  0x13   : > { %p79_p6 = scmp.eq.s32.totalorder %s77_s26, 0  ;;  %s1224_s29 = sshll.u32 %s1562_s22, 7 }
  0x14   : > { %s1179_s6 = sshll.u32 %s1658_s28, 7  ;;  %s2030_s1 = sld [smem:[#allocation18_spill]] }
  0x15   : > { %s1662_s30 = scalar_select %p79_p6, %s1554_s20, %s81_s25  }
  0x16   : > { %p1668_p7 = pnand %p1275_p5, %p90_p4  ;;  %s245_s11 = scalar_lea.vmem [#allocation6], %s1179_s6 }
  0x17   : > { %s255_s12 = sshll.u32 %s245_s11, 4  ;;  %s1672_s13 = scalar_lea.sflag [#allocation7], %s241_s27  ;;  %s256_s12 = int_to_ptr.vmem [resolvable:$true] %s255_s12 }
  0x18   : > { %p2021_p8 = pneg %p1668_p7  ;;  %s1381_s14 = scalar_lea.vmem %s256_s12, 2048 }
  0x19   : > { %p1382_p9 = scmp.ne.s32.totalorder %s256_s12, %s1381_s14  ;;  %s1568_s15 = smov [#allocation6]  }
  0x1a   : > { %s254_s9 = scalar_lea.hbm %s2030_s1, %s1224_s29  ;;  %s1386_s16 = sshll.u32 %s1568_s15, 4  ;;  %s1387_s16 = int_to_ptr.vmem [resolvable:$false] %s1386_s16 }
  0x1b   : > { %p1384_p10 = pnand %p1382_p9, %p2021_p8  ;;  %s1388_s17 = scalar_lea.vmem %s1387_s16, 4096 }
  0x1c   : > { %p1389_p12 = scmp.lt.s32.totalorder %s256_s12, %s1387_s16  ;;  %p1390_p13 = scmp.lt.s32.totalorder %s1388_s17, %s1381_s14 }
  0x1d   : > { %p1385_p11 = pneg %p1384_p10 }
  0x1e   : > { %p1391_p0 = por %p1390_p13, %p1389_p12 }
  0x20   : > { %p1392_p2 = pnand %p1391_p0, %p1385_p11 }
  0x22   : > { %1395 = shalt.err (!%p1392_p2)
}
  0x23   : > { %s1569_s25 = smov 256   ;;  %s1570_s26 = smov 128  }
  0x24   : > { %s1571_s27 = smov 8   ;;  %s1683_s29 = sadd.s32 4294967295, %s1566_s23  }
  0x25   : > { %1263 = dma.hbm_to_vmem [thread:$0]  (!%p1668_p7), %s254_s9, 2048, %s256_s12, %s1672_s13, %s1569_s25, %s1570_s26, %s1571_s27  }
  0x26   : > { %s1175_s6 = sadd.s32 4294967294, %s1566_s23   ;;  %p94_p4 = scmp.ne.s32.totalorder %s1550_s19, %s1546_s18 }
  0x27   : > { %p2020_p5 = scmp.eq.s32.totalorder %s1683_s29, 0  ;;  %p198_p6 = scmp.eq.s32.totalorder %s1683_s29, 1 }
  0x28   : > { %p204_p9 = scmp.eq.s32.totalorder %s1175_s6, 1  ;;  %p1176_p11 = scmp.ge.s32.totalorder %s1566_s23, 1 }
  0x29   : > { %p1692_p10 = por %p2020_p5, %p94_p4  ;;  %p1700_p12 = por %p198_p6, %p88_p1 }
  0x2a   : > { %p1704_p13 = por %p204_p9, %p94_p4  ;;  %p211_p0 = scmp.lt.s32.totalorder %s1566_s23, 3 }
  0x2b   : > { %s2033_s8 = scalar_select %p1700_p12, 1, 0 }
  0x2c   : > { %s2034_s9 = scalar_select %p1704_p13, 1, 0 }
  0x2d   : > { %p1709_p2 = pnand %p1176_p11, %p211_p0  ;;  %s1572_s12 = smov [#allocation3]  }
  0x2e   : > { %s227_s14 = sshll.u32 %s1572_s12, 4  ;;  %s2023_s15 = sshll.u32 %s1658_s28, 1  ;;  %s228_s14 = int_to_ptr.vmem [resolvable:$true] %s227_s14 }
  0x2f   : > { %p1256_p3 = pneg %p1709_p2  ;;  %s2025_s16 = sshll.u32 %s1562_s22, 5 }
  0x30   : > { %s2037_s2 = sld [smem:[#allocation19_spill]]  ;;  %s269_s6 = scalar_lea.vmem [#allocation8], %s2023_s15 }
  0x31   : > { %p1719_p1 = pnand %p1256_p3, %p2020_p5  ;;  %s277_s12 = sshll.u32 %s269_s6, 4  ;;  %s278_s12 = int_to_ptr.vmem [resolvable:$true] %s277_s12 }
  0x32   : > { %s1407_s1 = scalar_lea.vmem %s228_s14, 1024  ;;  %p1415_p11 = scmp.lt.s32.totalorder %s228_s14, %s228_s14 }
  0x33   : > { %p1398_p4 = pneg %p1719_p1  ;;  %p1408_p6 = scmp.ne.s32.totalorder %s228_s14, %s1407_s1 }
  0x34   : > { %p1416_p0 = scmp.lt.s32.totalorder %s1407_s1, %s1407_s1 }
  0x35   : > { %p1410_p9 = pnand %p1408_p6, %p1398_p4 }
  0x36   : > { %s1728_s27 = scalar_lea.hbm %s2037_s2, %s2025_s16  ;;  %p1417_p5 = por %p1416_p0, %p1415_p11 }
  0x37   : > { %p1411_p3 = pneg %p1410_p9 }
  0x39   : > { %p1418_p8 = pnand %p1417_p5, %p1411_p3 }
  0x3b   : > { %1421 = shalt.err (!%p1418_p8)
}
  0x3c   : > { %s1573_s24 = smov 64   ;;  %s1574_s25 = smov 4  }
  0x3d   : > { %s2038_s0 = sld [smem:[#allocation17_spill]]  ;;  %s1435_s6 = scalar_lea.vmem %s278_s12, 32 }
  0x3e   : > { %p1436_p13 = scmp.ne.s32.totalorder %s278_s12, %s1435_s6  ;;  %p2039_p12 = pneg %p1668_p7 }
  0x3f   : > { %s1575_s16 = smov [#allocation8]  }
  0x40   : > { %p1438_p4 = pnand %p1436_p13, %p2039_p12  ;;  %s1440_s1 = sshll.u32 %s1575_s16, 4  ;;  %s1441_s1 = int_to_ptr.vmem [resolvable:$false] %s1440_s1 }
  0x41   : > { %s1442_s2 = scalar_lea.vmem %s1441_s1, 64  ;;  %p1443_p8 = scmp.lt.s32.totalorder %s278_s12, %s1441_s1 }
  0x42   : > { %p1439_p6 = pneg %p1438_p4  ;;  %p1444_p5 = scmp.lt.s32.totalorder %s1442_s2, %s1435_s6 }
  0x43   : > { %1259 = dma.hbm_to_vmem [thread:$0]  (!%p1719_p1), %s2038_s0, 1024, %s228_s14, [#allocation4], %s1573_s24, %s1573_s24, %s1574_s25  }
  0x44   : > { %p1445_p9 = por %p1444_p5, %p1443_p8 }
  0x46   : > { %p1446_p3 = pnand %p1445_p9, %p1439_p6 }
  0x48   : > { %1449 = shalt.err (!%p1446_p3)
}
  0x49   : > { %1266 = dma.hbm_to_vmem [thread:$0]  (!%p1668_p7), %s1728_s27, 32, %s278_s12, %s1672_s13  }
  0x4a   : > { %s2040_s24 = sshll.u32 %s1562_s22, 5  ;;  %s2041_s17 = sshll.u32 %s1658_s28, 1 }
  0x4b   : > { %s302_s16 = scalar_lea.hbm %s2018_s4, %s2040_s24  ;;  %s296_s25 = scalar_lea.vmem [#allocation9], %s2041_s17 }
  0x4c   : > { %s304_s2 = sshll.u32 %s296_s25, 4  ;;  %s293_s26 = scalar_lea.sflag [#allocation10], %s1658_s28  ;;  %s305_s2 = int_to_ptr.vmem [resolvable:$true] %s304_s2 }
  0x4d   : > { %s1463_s6 = scalar_lea.vmem %s305_s2, 32  ;;  %p2042_p13 = pneg %p1668_p7 }
  0x4e   : > { %p1464_p12 = scmp.ne.s32.totalorder %s305_s2, %s1463_s6  ;;  %s1576_s1 = smov [#allocation9]  }
  0x4f   : > { %s1468_s0 = sshll.u32 %s1576_s1, 4  ;;  %s1469_s0 = int_to_ptr.vmem [resolvable:$false] %s1468_s0 }
  0x50   : > { %p1466_p1 = pnand %p1464_p12, %p2042_p13  ;;  %s1470_s13 = scalar_lea.vmem %s1469_s0, 64 }
  0x51   : > { %p1471_p0 = scmp.lt.s32.totalorder %s305_s2, %s1469_s0  ;;  %p1472_p4 = scmp.lt.s32.totalorder %s1470_s13, %s1463_s6 }
  0x52   : > { %p1467_p11 = pneg %p1466_p1 }
  0x53   : > { %p1473_p6 = por %p1472_p4, %p1471_p0 }
  0x55   : > { %p1474_p8 = pnand %p1473_p6, %p1467_p11 }
  0x57   : > { %1477 = shalt.err (!%p1474_p8)
}
  0x58   : > { %1269 = dma.hbm_to_vmem [thread:$0]  (!%p1668_p7), %s302_s16, 32, %s305_s2, %s293_s26  }
  0x59   : > { %313 = sbr.rel (%p1709_p2) target bundleno = 380 (0x17c), region = 40  ;;  %p2043_p5 = scmp.eq.s32.totalorder (!%p1709_p2), %s1683_s29, 0 }
  0x5e   : > { %1529 = dma.done.wait (%p2043_p5), [#allocation4], 1024   ;;  %p2044_p9 = pmov %p2043_p5 }
  0x5f   : > { %s319_s0 = sand.u32 1, %s1683_s29   ;;  %s1767_s28 = sand.u32 1, %s1550_s19  }
  0x60   : > { %1531 = vsyncadd (%p2044_p9), [#allocation4], 4294966272  ;;  %s1190_s27 = sshll.u32 %s1767_s28, 7  ;;  %s320_s12 = scalar_lea.sflag [#allocation7], %s319_s0 }
  0x61   : > { %s1770_s10 = scalar_lea.vmem [#allocation6], %s1190_s27 }
  0x62   : > { %1533 = dma.done.wait (%p1692_p10), %s320_s12, 2080  }
  0x63   : > { %1535 = vsyncadd (%p1692_p10), %s320_s12, 4294965216  ;;  %s1191_s11 = sshll.u32 %s1767_s28, 1  ;;  %s338_s14 = scalar_lea.sflag [#allocation10], %s1767_s28 }
  0x64   : > { %s1777_s24 = scalar_lea.vmem [#allocation8], %s1191_s11  ;;  %s1780_s29 = scalar_lea.vmem [#allocation9], %s1191_s11 }
  0x65   : > { %1537 = dma.done.wait (%p1692_p10), %s338_s14, 32  }
  0x66   : > { %1539 = vsyncadd (%p1692_p10), %s338_s14, 4294967264  ;;  %v1577_v0 = vmov 0   ;;  %v1336_v1 = vld [vmem:[%s1770_s10 + $0x74] ss:$8 sps:$4 sm:$0xff]   ;;  %v1338_v2 = vld [vmem:[%s1770_s10 + $0x70] ss:$8 sps:$4 sm:$0xff]   ;;  %v837_v25 = vlaneseq }
  0x67   : > { %655 = vmatprep.mubr.bf16.mxu0 %v1577_v0  ;;  %695 = vmatprep.mubr.bf16.mxu1 %v1577_v0  ;;  %v1339_v3 = vld [vmem:[%s1770_s10 + $0x64] ss:$8 sps:$4 sm:$0xff]   ;;  %v1341_v4 = vld [vmem:[%s1770_s10 + $0x60] ss:$8 sps:$4 sm:$0xff]   ;;  %v1342_v5 = vld [vmem:[%s1770_s10 + $0x54] ss:$8 sps:$4 sm:$0xff]  }
  0x68   : > { %623 = vmatprep.subr.bf16.mxu0 %v1336_v1  ;;  %1228 = vmatprep.subr.bf16.mxu1 %v1336_v1  ;;  %v1344_v6 = vld [vmem:[%s1770_s10 + $0x50] ss:$8 sps:$4 sm:$0xff]   ;;  %v1345_v7 = vld [vmem:[%s1770_s10 + $0x44] ss:$8 sps:$4 sm:$0xff]   ;;  %v1347_v8 = vld [vmem:[%s1770_s10 + $0x40] ss:$8 sps:$4 sm:$0xff]  }
  0x69   : > { %624 = vmatpush1.bf16.msra.mxu0 %v1338_v2  ;;  %1236 = vmatpush1.bf16.msra.mxu1 %v1338_v2  ;;  %v1348_v9 = vld [vmem:[%s1770_s10 + $0x34] ss:$8 sps:$4 sm:$0xff]   ;;  %v1350_v10 = vld [vmem:[%s1770_s10 + $0x30] ss:$8 sps:$4 sm:$0xff]   ;;  %v1351_v11 = vld [vmem:[%s1770_s10 + $0x24] ss:$8 sps:$4 sm:$0xff]  }
  0x6a   : > { %625 = vmatprep.subr.bf16.mxu0 %v1339_v3  ;;  %1229 = vmatprep.subr.bf16.mxu1 %v1339_v3  ;;  %v1353_v12 = vld [vmem:[%s1770_s10 + $0x20] ss:$8 sps:$4 sm:$0xff]   ;;  %v1354_v13 = vld [vmem:[%s1770_s10 + $0x14] ss:$8 sps:$4 sm:$0xff]   ;;  %v1356_v14 = vld [vmem:[%s1770_s10 + $0x10] ss:$8 sps:$4 sm:$0xff]  }
  0x6b   : > { %v1357_v15 = vld [vmem:[%s1770_s10 + $0x4] ss:$8 sps:$4 sm:$0xff]   ;;  %v1359_v16 = vld [vmem:[%s1770_s10] ss:$8 sps:$4 sm:$0xff]   ;;  %v1364_v21 = vld [vmem:[#allocation3 + $0x10] sm:$0xff]   ;;  %s1194_s7 = sshll.u32 %s1558_s21, 1 }
  0x6c   : > { %v1360_v17 = vld [vmem:[#allocation3] sm:$0xff]   ;;  %v1362_v19 = vld [vmem:[#allocation3 + $0x8] sm:$0xff]   ;;  %v1365_v22 = vld [vmem:[#allocation3 + $0x30] sm:$0xff]   ;;  %p387_p7 = scmp.lt.s32.totalorder %s1194_s7, 3  ;;  %v838_v26 = vshrl.u32 %v837_v25, 7  ;;  %s1193_s25 = sshll.u32 %s1767_s28, 8 }
  0x6d   : > { %626 = vmatpush1.bf16.msra.mxu0 %v1341_v4  ;;  %1237 = vmatpush1.bf16.msra.mxu1 %v1341_v4  ;;  %v1361_v18 = vld [vmem:[#allocation3 + $0x20] sm:$0xff]   ;;  %v1363_v20 = vld [vmem:[#allocation3 + $0x28] sm:$0xff]   ;;  %v1366_v23 = vld [vmem:[#allocation3 + $0x18] sm:$0xff]   ;;  %s1841_s2 = scalar_lea.vmem [#allocation11], %s1193_s25  ;;  %s1227_s26 = sshll.u32 %s1558_s21, 8 }
  0x6e   : > { %627 = vmatprep.subr.bf16.mxu0 %v1342_v5  ;;  %1230 = vmatprep.subr.bf16.mxu1 %v1342_v5  ;;  %v1367_v24 = vld [vmem:[#allocation3 + $0x38] sm:$0xff]   ;;  %s2057_s7 = smov (!%p387_p7, %s1194_s7), 3  ;;  %v839_v27 = vsub.s32 0, %v838_v26  ;;  %v835_v28 = vld [vmem:[%s1777_s24] sm:$0x3]  ;;  %v843_v29 = vsub.s32 1, %v838_v26  ;;  %s1956_s13 = scalar_lea.hbm %s2019_s5, %s1227_s26 }
  0x6f   : > { %s389_s17 = scalar_lea.vmem %s2017_s3, %s2057_s7  ;;  %v923_v32 = vld [vmem:[%s1780_s29] sm:$0x3]  ;;  %s1016_s6 = sshll.u32 %s1841_s2, 4  ;;  %s1960_s6 = int_to_ptr.vmem [resolvable:$true] %s1016_s6 }
  0x70   : > { %v879_v30 = vld [vmem:[%s389_s17] sm:$0x3]  ;;  %v1815_v31 = vrot.slane %v835_v28, %v839_v27  ;;  %v1820_v34 = vrot.slane %v835_v28, %v843_v29  ;;  %v1824_v38 = vrot.slane %v923_v32, %v839_v27  ;;  %v1829_v42 = vrot.slane %v923_v32, %v843_v29  ;;  %s1000_s0 = scalar_lea.sflag [#allocation5], %s1767_s28  ;;  %s1478_s27 = scalar_lea.vmem %s1960_s6, 4096 }
  0x71   : > { %628 = vmatpush1.bf16.msra.mxu0 %v1344_v6  ;;  %1238 = vmatpush1.bf16.msra.mxu1 %v1344_v6  ;;  %v1818_v33 = vrot.slane %v879_v30, %v839_v27  ;;  %v1827_v40 = vrot.slane %v879_v30, %v843_v29  ;;  %p1479_p10 = scmp.ne.s32.totalorder %s1960_s6, %s1478_s27  ;;  %p2045_p2 = scmp.ne.s32.totalorder %s2033_s8, 0 }
  0x72   : > { %629 = vmatprep.subr.bf16.mxu0 %v1345_v7  ;;  %1231 = vmatprep.subr.bf16.mxu1 %v1345_v7  ;;  %s1578_s12 = smov [#allocation11]  }
  0x73   : > { %p1480_p3 = pnand %p1479_p10, %p2045_p2  ;;  %s1482_s10 = sshll.u32 %s1578_s12, 4  ;;  %s1483_s10 = int_to_ptr.vmem [resolvable:$false] %s1482_s10 }
  0x74   : > { %s1484_s11 = scalar_lea.vmem %s1483_s10, 8192  ;;  %p1485_p13 = scmp.lt.s32.totalorder %s1960_s6, %s1483_s10 }
  0x75   : > { %630 = vmatpush1.bf16.msra.mxu0 %v1347_v8  ;;  %1239 = vmatpush1.bf16.msra.mxu1 %v1347_v8  ;;  %p1481_p12 = pneg %p1480_p3  ;;  %p1486_p1 = scmp.lt.s32.totalorder %s1484_s11, %s1478_s27 }
  0x76   : > { %631 = vmatprep.subr.bf16.mxu0 %v1348_v9  ;;  %1232 = vmatprep.subr.bf16.mxu1 %v1348_v9 }
  0x77   : > { %p1487_p11 = por %p1486_p1, %p1485_p13 }
  0x79   : > { %632 = vmatpush1.bf16.msra.mxu0 %v1350_v10  ;;  %1240 = vmatpush1.bf16.msra.mxu1 %v1350_v10  ;;  %p1488_p0 = pnand %p1487_p11, %p1481_p12 }
  0x7a   : > { %633 = vmatprep.subr.bf16.mxu0 %v1351_v11  ;;  %1233 = vmatprep.subr.bf16.mxu1 %v1351_v11 }
  0x7d   : > { %634 = vmatpush1.bf16.msra.mxu0 %v1353_v12  ;;  %1241 = vmatpush1.bf16.msra.mxu1 %v1353_v12 }
  0x7e   : > { %635 = vmatprep.subr.bf16.mxu0 %v1354_v13  ;;  %1234 = vmatprep.subr.bf16.mxu1 %v1354_v13 }
  0x81   : > { %636 = vmatpush1.bf16.msra.mxu0 %v1356_v14  ;;  %1242 = vmatpush1.bf16.msra.mxu1 %v1356_v14 }
  0x82   : > { %637 = vmatprep.subr.bf16.mxu0 %v1357_v15  ;;  %1235 = vmatprep.subr.bf16.mxu1 %v1357_v15 }
  0x85   : > { %638 = vmatpush1.bf16.msra.mxu0 %v1359_v16  ;;  %1243 = vmatpush1.bf16.msra.mxu1 %v1359_v16 }
  0x88   : > { %656 = vmatmul.mubr.bf16.vlgmr.msra.gmra.mxu0 %v1360_v17  ;;  %696 = vmatmul.mubr.bf16.vlgmr.msra.gmra.mxu1 %v1361_v18 }
  0x89   : > { %665 = vmatprep.mubr.bf16.mxu0 %v1577_v0  ;;  %705 = vmatprep.mubr.bf16.mxu1 %v1577_v0 }
  0x90   : > { %666 = vmatmul.mubr.bf16.gmra.mxu0 %v1362_v19  ;;  %706 = vmatmul.mubr.bf16.gmra.mxu1 %v1363_v20 }
  0x91   : > { %675 = vmatprep.mubr.bf16.mxu0 %v1577_v0  ;;  %715 = vmatprep.mubr.bf16.mxu1 %v1577_v0 }
  0x98   : > { %676 = vmatmul.mubr.bf16.gmra.mxu0 %v1364_v21  ;;  %716 = vmatmul.mubr.bf16.gmra.mxu1 %v1365_v22 }
  0x99   : > { %685 = vmatprep.mubr.bf16.mxu0 %v1577_v0  ;;  %725 = vmatprep.mubr.bf16.mxu1 %v1577_v0 }
  0xa0   : > { %686 = vmatmul.mubr.bf16.gmra.mxu0 %v1366_v23  ;;  %726 = vmatmul.mubr.bf16.gmra.mxu1 %v1367_v24 }
 0x148   : > { %v657_v35 = vpop.f32.mrf.mxu0  ;;  %v697_v36 = vpop.f32.mrf.mxu1 }
 0x149   : > { %v847_v37 = vadd.f32 %v1815_v31, %v657_v35  ;;  %v863_v39 = vadd.f32 %v1815_v31, %v697_v36 }
 0x14a   : > { %v659_v41 = vpop.f32.mrf.mxu0  ;;  %v699_v43 = vpop.f32.mrf.mxu1 }
 0x14b   : > { %v891_v44 = vmul.f32 %v1818_v33, %v847_v37  ;;  %v907_v45 = vmul.f32 %v1818_v33, %v863_v39  ;;  %v848_v46 = vadd.f32 %v1820_v34, %v659_v41  ;;  %v864_v47 = vadd.f32 %v1820_v34, %v699_v43 }
 0x14c   : > { %v661_v48 = vpop.f32.mrf.mxu0  ;;  %v701_v49 = vpop.f32.mrf.mxu1 }
 0x14d   : > { %v935_v50 = vadd.f32 %v1824_v38, %v891_v44  ;;  %v951_v51 = vadd.f32 %v1824_v38, %v907_v45  ;;  %v892_v52 = vmul.f32 %v1827_v40, %v848_v46  ;;  %v908_v53 = vmul.f32 %v1827_v40, %v864_v47 }
 0x14e   : > { %v849_v54 = vadd.f32 %v1815_v31, %v661_v48  ;;  %v865_v55 = vadd.f32 %v1815_v31, %v701_v49  ;;  %v663_v56 = vpop.f32.mrf.mxu0  ;;  %v703_v57 = vpop.f32.mrf.mxu1 }
 0x14f   : > { %967 = vst [vmem:[%s1841_s2] sm:$0xff] %v935_v50  ;;  %983 = vst [vmem:[%s1841_s2 + $0x80] sm:$0xff] %v951_v51  ;;  %v936_v58 = vadd.f32 %v1829_v42, %v892_v52  ;;  %v952_v59 = vadd.f32 %v1829_v42, %v908_v53  ;;  %v850_v60 = vadd.f32 %v1820_v34, %v663_v56 }
 0x150   : > { %v866_v61 = vadd.f32 %v1820_v34, %v703_v57  ;;  %v893_v62 = vmul.f32 %v1818_v33, %v849_v54  ;;  %v909_v63 = vmul.f32 %v1818_v33, %v865_v55  ;;  %v667_v0 = vpop.f32.mrf.mxu0  ;;  %v707_v1 = vpop.f32.mrf.mxu1 }
 0x151   : > { %968 = vst [vmem:[%s1841_s2 + $0x8] sm:$0xff] %v936_v58  ;;  %984 = vst [vmem:[%s1841_s2 + $0x88] sm:$0xff] %v952_v59  ;;  %v894_v2 = vmul.f32 %v1827_v40, %v850_v60  ;;  %v851_v4 = vadd.f32 %v1815_v31, %v667_v0  ;;  %v867_v5 = vadd.f32 %v1815_v31, %v707_v1 }
 0x152   : > { %v910_v3 = vmul.f32 %v1827_v40, %v866_v61  ;;  %v937_v6 = vadd.f32 %v1824_v38, %v893_v62  ;;  %v953_v7 = vadd.f32 %v1824_v38, %v909_v63  ;;  %v669_v8 = vpop.f32.mrf.mxu0  ;;  %v709_v9 = vpop.f32.mrf.mxu1 }
 0x153   : > { %v938_v10 = vadd.f32 %v1829_v42, %v894_v2  ;;  %v895_v12 = vmul.f32 %v1818_v33, %v851_v4  ;;  %v911_v13 = vmul.f32 %v1818_v33, %v867_v5  ;;  %v852_v14 = vadd.f32 %v1820_v34, %v669_v8 }
 0x154   : > { %v954_v11 = vadd.f32 %v1829_v42, %v910_v3  ;;  %969 = vst [vmem:[%s1841_s2 + $0x10] sm:$0xff] %v937_v6  ;;  %985 = vst [vmem:[%s1841_s2 + $0x90] sm:$0xff] %v953_v7  ;;  %v868_v15 = vadd.f32 %v1820_v34, %v709_v9  ;;  %v671_v16 = vpop.f32.mrf.mxu0  ;;  %v711_v17 = vpop.f32.mrf.mxu1 }
 0x155   : > { %970 = vst [vmem:[%s1841_s2 + $0x18] sm:$0xff] %v938_v10  ;;  %v939_v18 = vadd.f32 %v1824_v38, %v895_v12  ;;  %v955_v19 = vadd.f32 %v1824_v38, %v911_v13  ;;  %v853_v20 = vadd.f32 %v1815_v31, %v671_v16  ;;  %v869_v21 = vadd.f32 %v1815_v31, %v711_v17 }
 0x156   : > { %986 = vst [vmem:[%s1841_s2 + $0x98] sm:$0xff] %v954_v11  ;;  %v896_v22 = vmul.f32 %v1827_v40, %v852_v14  ;;  %v912_v23 = vmul.f32 %v1827_v40, %v868_v15  ;;  %v673_v24 = vpop.f32.mrf.mxu0  ;;  %v713_v25 = vpop.f32.mrf.mxu1 }
 0x157   : > { %971 = vst [vmem:[%s1841_s2 + $0x20] sm:$0xff] %v939_v18  ;;  %987 = vst [vmem:[%s1841_s2 + $0xa0] sm:$0xff] %v955_v19  ;;  %v897_v26 = vmul.f32 %v1818_v33, %v853_v20  ;;  %v913_v27 = vmul.f32 %v1818_v33, %v869_v21  ;;  %v854_v28 = vadd.f32 %v1820_v34, %v673_v24 }
 0x158   : > { %v870_v29 = vadd.f32 %v1820_v34, %v713_v25  ;;  %v940_v30 = vadd.f32 %v1829_v42, %v896_v22  ;;  %v956_v32 = vadd.f32 %v1829_v42, %v912_v23  ;;  %v677_v35 = vpop.f32.mrf.mxu0  ;;  %v717_v36 = vpop.f32.mrf.mxu1 }
 0x159   : > { %v941_v37 = vadd.f32 %v1824_v38, %v897_v26  ;;  %v957_v39 = vadd.f32 %v1824_v38, %v913_v27  ;;  %v898_v41 = vmul.f32 %v1827_v40, %v854_v28  ;;  %v855_v44 = vadd.f32 %v1815_v31, %v677_v35 }
 0x15a   : > { %v914_v43 = vmul.f32 %v1827_v40, %v870_v29  ;;  %972 = vst [vmem:[%s1841_s2 + $0x28] sm:$0xff] %v940_v30  ;;  %988 = vst [vmem:[%s1841_s2 + $0xa8] sm:$0xff] %v956_v32  ;;  %v871_v45 = vadd.f32 %v1815_v31, %v717_v36  ;;  %v679_v46 = vpop.f32.mrf.mxu0  ;;  %v719_v47 = vpop.f32.mrf.mxu1 }
 0x15b   : > { %973 = vst [vmem:[%s1841_s2 + $0x30] sm:$0xff] %v941_v37  ;;  %989 = vst [vmem:[%s1841_s2 + $0xb0] sm:$0xff] %v957_v39  ;;  %v942_v48 = vadd.f32 %v1829_v42, %v898_v41  ;;  %v856_v50 = vadd.f32 %v1820_v34, %v679_v46  ;;  %v872_v51 = vadd.f32 %v1820_v34, %v719_v47 }
 0x15c   : > { %v958_v49 = vadd.f32 %v1829_v42, %v914_v43  ;;  %v899_v52 = vmul.f32 %v1818_v33, %v855_v44  ;;  %v915_v53 = vmul.f32 %v1818_v33, %v871_v45  ;;  %v681_v54 = vpop.f32.mrf.mxu0  ;;  %v721_v55 = vpop.f32.mrf.mxu1 }
 0x15d   : > { %974 = vst [vmem:[%s1841_s2 + $0x38] sm:$0xff] %v942_v48  ;;  %v900_v56 = vmul.f32 %v1827_v40, %v856_v50  ;;  %v916_v57 = vmul.f32 %v1827_v40, %v872_v51  ;;  %v857_v58 = vadd.f32 %v1815_v31, %v681_v54  ;;  %v873_v59 = vadd.f32 %v1815_v31, %v721_v55 }
 0x15e   : > { %990 = vst [vmem:[%s1841_s2 + $0xb8] sm:$0xff] %v958_v49  ;;  %v943_v60 = vadd.f32 %v1824_v38, %v899_v52  ;;  %v959_v61 = vadd.f32 %v1824_v38, %v915_v53  ;;  %v683_v62 = vpop.f32.mrf.mxu0  ;;  %v723_v63 = vpop.f32.mrf.mxu1 }
 0x15f   : > { %v944_v0 = vadd.f32 %v1829_v42, %v900_v56  ;;  %v960_v1 = vadd.f32 %v1829_v42, %v916_v57  ;;  %v901_v2 = vmul.f32 %v1818_v33, %v857_v58  ;;  %v917_v3 = vmul.f32 %v1818_v33, %v873_v59 }
 0x160   : > { %975 = vst [vmem:[%s1841_s2 + $0x40] sm:$0xff] %v943_v60  ;;  %991 = vst [vmem:[%s1841_s2 + $0xc0] sm:$0xff] %v959_v61  ;;  %v858_v4 = vadd.f32 %v1820_v34, %v683_v62  ;;  %v874_v5 = vadd.f32 %v1820_v34, %v723_v63  ;;  %v687_v6 = vpop.f32.mrf.mxu0  ;;  %v727_v7 = vpop.f32.mrf.mxu1 }
 0x161   : > { %976 = vst [vmem:[%s1841_s2 + $0x48] sm:$0xff] %v944_v0  ;;  %992 = vst [vmem:[%s1841_s2 + $0xc8] sm:$0xff] %v960_v1  ;;  %v945_v8 = vadd.f32 %v1824_v38, %v901_v2  ;;  %v961_v9 = vadd.f32 %v1824_v38, %v917_v3  ;;  %v859_v10 = vadd.f32 %v1815_v31, %v687_v6 }
 0x162   : > { %v875_v11 = vadd.f32 %v1815_v31, %v727_v7  ;;  %v902_v12 = vmul.f32 %v1827_v40, %v858_v4  ;;  %v918_v13 = vmul.f32 %v1827_v40, %v874_v5  ;;  %v689_v14 = vpop.f32.mrf.mxu0  ;;  %v729_v15 = vpop.f32.mrf.mxu1 }
 0x163   : > { %977 = vst [vmem:[%s1841_s2 + $0x50] sm:$0xff] %v945_v8  ;;  %993 = vst [vmem:[%s1841_s2 + $0xd0] sm:$0xff] %v961_v9  ;;  %v903_v16 = vmul.f32 %v1818_v33, %v859_v10  ;;  %v860_v18 = vadd.f32 %v1820_v34, %v689_v14  ;;  %v876_v19 = vadd.f32 %v1820_v34, %v729_v15 }
 0x164   : > { %v919_v17 = vmul.f32 %v1818_v33, %v875_v11  ;;  %v946_v20 = vadd.f32 %v1829_v42, %v902_v12  ;;  %v962_v21 = vadd.f32 %v1829_v42, %v918_v13  ;;  %v691_v22 = vpop.f32.mrf.mxu0  ;;  %v731_v23 = vpop.f32.mrf.mxu1 }
 0x165   : > { %v947_v24 = vadd.f32 %v1824_v38, %v903_v16  ;;  %v904_v26 = vmul.f32 %v1827_v40, %v860_v18  ;;  %v920_v27 = vmul.f32 %v1827_v40, %v876_v19  ;;  %v861_v28 = vadd.f32 %v1815_v31, %v691_v22 }
 0x166   : > { %v963_v25 = vadd.f32 %v1824_v38, %v919_v17  ;;  %978 = vst [vmem:[%s1841_s2 + $0x58] sm:$0xff] %v946_v20  ;;  %994 = vst [vmem:[%s1841_s2 + $0xd8] sm:$0xff] %v962_v21  ;;  %v877_v29 = vadd.f32 %v1815_v31, %v731_v23  ;;  %v693_v30 = vpop.f32.mrf.mxu0  ;;  %v733_v32 = vpop.f32.mrf.mxu1 }
 0x167   : > { %979 = vst [vmem:[%s1841_s2 + $0x60] sm:$0xff] %v947_v24  ;;  %v948_v35 = vadd.f32 %v1829_v42, %v904_v26  ;;  %v964_v36 = vadd.f32 %v1829_v42, %v920_v27  ;;  %v862_v37 = vadd.f32 %v1820_v34, %v693_v30  ;;  %v878_v39 = vadd.f32 %v1820_v34, %v733_v32 }
 0x168   : > { %995 = vst [vmem:[%s1841_s2 + $0xe0] sm:$0xff] %v963_v25  ;;  %v905_v31 = vmul.f32 %v1818_v33, %v861_v28  ;;  %v921_v41 = vmul.f32 %v1818_v33, %v877_v29 }
 0x169   : > { %980 = vst [vmem:[%s1841_s2 + $0x68] sm:$0xff] %v948_v35  ;;  %996 = vst [vmem:[%s1841_s2 + $0xe8] sm:$0xff] %v964_v36  ;;  %v906_v43 = vmul.f32 %v1827_v40, %v862_v37  ;;  %v922_v44 = vmul.f32 %v1827_v40, %v878_v39 }
 0x16a   : > { %v949_v34 = vadd.f32 %v1824_v38, %v905_v31  ;;  %v965_v45 = vadd.f32 %v1824_v38, %v921_v41 }
 0x16b   : > { %v950_v33 = vadd.f32 %v1829_v42, %v906_v43  ;;  %v966_v46 = vadd.f32 %v1829_v42, %v922_v44 }
 0x16c   : > { %981 = vst [vmem:[%s1841_s2 + $0x70] sm:$0xff] %v949_v34  ;;  %997 = vst [vmem:[%s1841_s2 + $0xf0] sm:$0xff] %v965_v45 }
 0x16d   : > { %982 = vst [vmem:[%s1841_s2 + $0x78] sm:$0xff] %v950_v33  ;;  %998 = vst [vmem:[%s1841_s2 + $0xf8] sm:$0xff] %v966_v46 }
 0x16e   : > { %1491 = shalt.err (!%p1488_p0)
}
 0x16f   : > { %s1492_s24 = scalar_lea.hbm %s1956_s13, 4096  ;;  %s1496_s7 = scalar_lea.hbm %s2019_s5, 8192 }
 0x170   : > { %p1493_p4 = scmp.ne.s32.totalorder %s1956_s13, %s1492_s24  ;;  %p1497_p5 = scmp.lt.s32.totalorder %s1956_s13, %s2019_s5 }
 0x171   : > { %p1498_p9 = scmp.lt.s32.totalorder %s1496_s7, %s1492_s24 }
 0x172   : > { %p1494_p6 = pnand %p1493_p4, %p2045_p2 }
 0x173   : > { %p1499_p7 = por %p1498_p9, %p1497_p5 }
 0x174   : > { %p1495_p8 = pneg %p1494_p6 }
 0x176   : > { %p1500_p10 = pnand %p1499_p7, %p1495_p8 }
 0x178   : > { %1503 = shalt.err (!%p1500_p10)
}
 0x179   : > { %s1579_s17 = smov 256   ;;  %s1580_s25 = smov 512  }
 0x17a   : > { %s1581_s2 = smov 16  }
 0x17b   : > { %1254 = dma.vmem_to_hbm [thread:$0]  (%p2045_p2), %s1960_s6, 4096, %s1956_s13, %s1000_s0, %s1579_s17, %s1580_s25, %s1581_s2  }
 0x17c PF: > { %s1031_s26 = sand.u32 1, %s1546_s18   ;;  %p2046_p3 = scmp.ne.s32.totalorder %s2034_s9, 0 }
 0x17d   : > { %p2047_p12 = scmp.ge.s32.totalorder %s1566_s23, 2  ;;  %s1032_s21 = scalar_lea.sflag [#allocation5], %s1031_s26 }
 0x17f   : > { %p1271_p13 = pnand %p2047_p12, %p2046_p3 }
 0x181   : > { %p1272_p1 = pneg %p1271_p13 }
 0x183   : > { %1541 = dma.done.wait (%p1272_p1), %s1032_s21, 4096  }
 0x184   : > { %1543 = vsyncadd (%p1272_p1), %s1032_s21, 4294963200  ;;  %s25_s23 = sadd.s32 1, %s1566_s23   ;;  %s2048_s8 = sld [smem:[#allocation16_spill]] }
 0x185   : > { %p22_p11 = scmp.ge.s32.totalorder %s25_s23, 4   ;;  %s2049_s18 = smov %s1550_s19 }
 0x186   : > { %s2050_s19 = smov %s1554_s20  ;;  %s2051_s20 = smov %s1662_s30 }
 0x187   : > { %s2052_s21 = smov %s1562_s22  ;;  %24 = sbr.rel (!%p22_p11) target bundleno = 13 (0xd), region = 126 }
 0x18a   : > { %s2053_s22 = smov %s2048_s8 }
 0x18c   :  { %1037 = vsyncpa [#allocation4], 1 }
 0x18d   :  { %1039 = vsyncpa [#allocation4 + $0x1], 1 }
 0x18e   :  { %1040 = vsyncpa [#allocation7], 1 }
 0x18f   :  { %1042 = vsyncpa [#allocation7 + $0x1], 1 }
 0x190   :  { %1043 = vsyncpa [#allocation10], 1 }
 0x191   :  { %1045 = vsyncpa [#allocation10 + $0x1], 1 }
 0x192   :  { %1046 = vsyncpa [#allocation5], 1 }
 0x193   :  { %1048 = vsyncpa [#allocation5 + $0x1], 1 }

</bundles_post_ra>
